<compile_context>
chip_gen: v7x
topology: tpu7x:2x2x1
jax: 0.10.0
libtpu: 0.0.40
codegen_flags: <defaults>
</compile_context>

<pallas_src>
import functools

import jax
import jax.numpy as jnp
from jax.experimental import pallas as pl
from jax.experimental.pallas import tpu as pltpu


def _gce_loss_kernel(x_ref, lbl_ref, out_ref, acc_ref, *, q, scale, total_n):
    # x_ref  : (TILE_N, C) logits tile in VMEM (any float dtype; cast to f32 here)
    # lbl_ref: (TILE_N, 1) int32 labels tile in VMEM
    # out_ref: (1, 1) f32 scalar loss in SMEM (written on the last grid step)
    # acc_ref: (1, 1) f32 SMEM scratch running sum (persists across grid steps)
    i = pl.program_id(0)

    @pl.when(i == 0)
    def _():
        acc_ref[0, 0] = jnp.float32(0.0)

    x = x_ref[...].astype(jnp.float32)                    # (tn, C)
    lbl = lbl_ref[...]                                    # (tn, 1) int32
    tn, c = x.shape

    # Single full-width pass: stable exp, then two row reductions off it.
    m = jnp.max(x, axis=1, keepdims=True)                 # (tn, 1)
    e = jnp.exp(x - m)                                    # (tn, C)  (EUP)
    s = jnp.sum(e, axis=1, keepdims=True)                 # (tn, 1)  (XLU)

    # Gather the label column from e via a lane-iota select + row sum.
    class_idx = jax.lax.broadcasted_iota(jnp.int32, (tn, c), 1)
    e_g = jnp.sum(jnp.where(class_idx == lbl, e, 0.0), axis=1, keepdims=True)

    # yg = clamp(softmax(x)[label], 1e-7, 1.0); softmax row value = e_g / s <= 1.
    yg = jnp.clip(e_g / s, 1e-7, 1.0)                     # (tn, 1)

    # Per-sample GCE numerator (1 - yg**q); /q and /N folded into `scale`.
    per = 1.0 - jnp.exp(q * jnp.log(yg))                  # (tn, 1)

    # Mask rows past the true N (last partial tile may contain garbage / NaN).
    row = i * tn + jax.lax.broadcasted_iota(jnp.int32, (tn, 1), 0)
    per = jnp.where(row < total_n, per, 0.0)

    acc_ref[0, 0] += jnp.sum(per)

    @pl.when(i == pl.num_programs(0) - 1)
    def _():
        out_ref[0, 0] = acc_ref[0, 0] * scale


def lnl_loss_gce(cls_score, label, *, q=0.7, loss_weight=1.0, tile_n=None):
    """LNLLoss(loss_type='GCE').forward(cls_score, label) with default args.

    Accepts bf16 or f32 logits directly (no wrapper-side cast / HBM copy).
    """
    n, c = cls_score.shape
    dtype_bytes = jnp.dtype(cls_score.dtype).itemsize
    label2d = label.astype(jnp.int32).reshape(n, 1)

    if tile_n is None:
        # ~8 MiB per logits buffer (double-buffered -> ~16 MiB resident),
        # comfortably inside the v7x 64 MiB VMEM and the scoped limit below.
        row_budget = max(8, (8 * 1024 * 1024) // max(1, c * dtype_bytes))
        if n <= row_budget:
            tile_n = n                      # single block (equals full dim -> legal)
        else:
            tile_n = max(8, min(2048, (row_budget // 8) * 8))
    grid = (pl.cdiv(n, tile_n),)

    kernel = functools.partial(
        _gce_loss_kernel,
        q=float(q),
        scale=float(loss_weight) / (float(q) * float(n)),
        total_n=int(n),
    )

    cost = pl.CostEstimate(
        flops=6 * n * c,
        transcendentals=n * c + 2 * n,
        bytes_accessed=n * c * dtype_bytes + n * 4 + 4,
    )

    out = pl.pallas_call(
        kernel,
        out_shape=jax.ShapeDtypeStruct((1, 1), jnp.float32),
        grid_spec=pltpu.PrefetchScalarGridSpec(
            num_scalar_prefetch=0,
            grid=grid,
            in_specs=[
                pl.BlockSpec((tile_n, c), lambda i: (i, 0)),   # logits tile
                pl.BlockSpec((tile_n, 1), lambda i: (i, 0)),   # labels tile
            ],
            out_specs=pl.BlockSpec((1, 1), lambda i: (0, 0),
                                   memory_space=pltpu.SMEM),
            scratch_shapes=[pltpu.SMEM((1, 1), jnp.float32)],
        ),
        compiler_params=pltpu.CompilerParams(
            dimension_semantics=("arbitrary",),        # scalar accumulator carried
            vmem_limit_bytes=40 * 1024 * 1024,
        ),
        cost_estimate=cost,
    )(cls_score, label2d)
    return out[0, 0]


def _reference_gce(cls_score, label, q=0.7, loss_weight=1.0):
    # pure-JAX reference for the same math (sanity check)
    p = jax.nn.softmax(cls_score.astype(jnp.float32), axis=1)
    p = jnp.clip(p, 1e-7, 1.0)
    yg = jnp.take_along_axis(p, label.reshape(-1, 1).astype(jnp.int32), axis=1)
    loss = (1.0 - yg ** q) / q
    return loss_weight * jnp.mean(loss)


if __name__ == "__main__":
    key = jax.random.PRNGKey(0)
    k1, k2, k3, k4 = jax.random.split(key, 4)

    # Case 1: small single-tile classification problem (8 samples, 16 classes).
    N, C = 8, 16
    cls_score = jax.random.normal(k1, (N, C), dtype=jnp.float32) * 2.0
    label = jax.random.randint(k2, (N,), 0, C, dtype=jnp.int32)
    loss = jax.block_until_ready(lnl_loss_gce(cls_score, label))
    ref = _reference_gce(cls_score, label)
    assert jnp.allclose(loss, ref, rtol=1e-5, atol=1e-5), (loss, ref)

    # Case 2: multi-tile grid with a partial (masked) last tile:
    # N=20 rows, TILE_N=8 -> grid=(3,), last tile has 4 masked rows.
    N2, C2 = 20, 16
    cls2 = jax.random.normal(k3, (N2, C2), dtype=jnp.float32) * 2.0
    lab2 = jax.random.randint(k4, (N2,), 0, C2, dtype=jnp.int32)
    loss2 = jax.block_until_ready(lnl_loss_gce(cls2, lab2, tile_n=8))
    ref2 = _reference_gce(cls2, lab2)
    assert jnp.allclose(loss2, ref2, rtol=1e-5, atol=1e-5), (loss2, ref2)

    # Case 3: bf16 logits streamed directly (f32 cast happens inside the kernel).
    cls_bf16 = cls_score.astype(jnp.bfloat16)
    loss_bf16 = jax.block_until_ready(lnl_loss_gce(cls_bf16, label))
    ref_bf16 = _reference_gce(cls_bf16.astype(jnp.float32), label)
    assert jnp.allclose(loss_bf16, ref_bf16, rtol=1e-2, atol=1e-2), (loss_bf16, ref_bf16)

    print("KERNEL_OK")
</pallas_src>

<mosaic_0001>
module attributes {stable_mosaic.version = 11 : i64} {
  func.func @_gce_loss_kernel(%arg0: i32, %arg1: memref<8x16xf32, #tpu.memory_space<vmem>>, %arg2: memref<8x1xi32, #tpu.memory_space<vmem>>, %arg3: memref<1x1xf32, #tpu.memory_space<smem>>, %arg4: memref<1x1xf32, #tpu.memory_space<smem>>) attributes {dimension_semantics = [#tpu.dimension_semantics<arbitrary>], iteration_bounds = array<i64: 1>, scalar_prefetch = 0 : i64, scratch_operands = 1 : i64, tpu.core_type = #tpu.core_type<tc>, window_params = [{transform_indices = @transform_0, window_bounds = array<i64: 8, 16>}, {transform_indices = @transform_1, window_bounds = array<i64: 8, 1>}, {transform_indices = @transform_2, window_bounds = array<i64: 1, 1>}]} {
    %c0_i32 = arith.constant 0 : i32
    %0 = arith.cmpi eq, %arg0, %c0_i32 : i32
    %1 = arith.extui %0 : i1 to i32
    %c0_i32_0 = arith.constant 0 : i32
    %2 = arith.cmpi ne, %1, %c0_i32_0 : i32
    scf.if %2 {
      %cst_20 = arith.constant 0.000000e+00 : f32
      %c0_21 = arith.constant 0 : index
      %c0_22 = arith.constant 0 : index
      %48 = memref.load %arg4[%c0_21, %c0_22] : memref<1x1xf32, #tpu.memory_space<smem>>
      memref.store %cst_20, %arg4[%c0_21, %c0_22] : memref<1x1xf32, #tpu.memory_space<smem>>
    } else {
    }
    %c0 = arith.constant 0 : index
    %c0_1 = arith.constant 0 : index
    %3 = vector.load %arg1[%c0, %c0_1] : memref<8x16xf32, #tpu.memory_space<vmem>>, vector<8x16xf32>
    %c0_2 = arith.constant 0 : index
    %c0_3 = arith.constant 0 : index
    %4 = vector.load %arg2[%c0_2, %c0_3] : memref<8x1xi32, #tpu.memory_space<vmem>>, vector<8x1xi32>
    %cst = arith.constant dense<0xFF800000> : vector<8xf32>
    %5 = vector.multi_reduction <maximumf>, %3, %cst [1] : vector<8x16xf32> to vector<8xf32>
    %6 = vector.shape_cast %5 : vector<8xf32> to vector<8x1xf32>
    %7 = vector.broadcast %6 : vector<8x1xf32> to vector<8x16xf32>
    %8 = arith.subf %3, %7 : vector<8x16xf32>
    %9 = math.exp %8 : vector<8x16xf32>
    %cst_4 = arith.constant dense<0.000000e+00> : vector<8xf32>
    %10 = vector.multi_reduction <add>, %9, %cst_4 [1] : vector<8x16xf32> to vector<8xf32>
    %11 = vector.shape_cast %10 : vector<8xf32> to vector<8x1xf32>
    %12 = tpu.iota {dimensions = array<i32: 1>} : vector<8x16xi32>
    %13 = vector.broadcast %4 : vector<8x1xi32> to vector<8x16xi32>
    %14 = arith.cmpi eq, %12, %13 : vector<8x16xi32>
    %cst_5 = arith.constant 0.000000e+00 : f32
    %15 = vector.broadcast %cst_5 : f32 to vector<8x16xf32>
    %16 = arith.select %14, %9, %15 : vector<8x16xi1>, vector<8x16xf32>
    %cst_6 = arith.constant dense<0.000000e+00> : vector<8xf32>
    %17 = vector.multi_reduction <add>, %16, %cst_6 [1] : vector<8x16xf32> to vector<8xf32>
    %18 = vector.shape_cast %17 : vector<8xf32> to vector<8x1xf32>
    %19 = arith.divf %18, %11 : vector<8x1xf32>
    %cst_7 = arith.constant 1.000000e-07 : f32
    %cst_8 = arith.constant 1.000000e+00 : f32
    %20 = vector.broadcast %cst_7 : f32 to vector<8x1xf32>
    %21 = arith.maximumf %20, %19 : vector<8x1xf32>
    %22 = vector.broadcast %cst_8 : f32 to vector<8x1xf32>
    %23 = arith.minimumf %22, %21 : vector<8x1xf32>
    %24 = math.log %23 : vector<8x1xf32>
    %cst_9 = arith.constant 0.699999988 : f32
    %25 = vector.broadcast %cst_9 : f32 to vector<8x1xf32>
    %26 = arith.mulf %25, %24 : vector<8x1xf32>
    %27 = math.exp %26 : vector<8x1xf32>
    %cst_10 = arith.constant 1.000000e+00 : f32
    %28 = vector.broadcast %cst_10 : f32 to vector<8x1xf32>
    %29 = arith.subf %28, %27 : vector<8x1xf32>
    %c8_i32 = arith.constant 8 : i32
    %30 = arith.muli %arg0, %c8_i32 : i32
    %31 = tpu.iota {dimensions = array<i32: 0>} : vector<8x1xi32>
    %32 = vector.broadcast %30 : i32 to vector<8x1xi32>
    %33 = arith.addi %32, %31 : vector<8x1xi32>
    %c8_i32_11 = arith.constant 8 : i32
    %34 = vector.broadcast %c8_i32_11 : i32 to vector<8x1xi32>
    %35 = arith.cmpi slt, %33, %34 : vector<8x1xi32>
    %cst_12 = arith.constant 0.000000e+00 : f32
    %36 = vector.broadcast %cst_12 : f32 to vector<8x1xf32>
    %37 = arith.select %35, %29, %36 : vector<8x1xi1>, vector<8x1xf32>
    %c0_13 = arith.constant 0 : index
    %c0_14 = arith.constant 0 : index
    %38 = memref.load %arg4[%c0_13, %c0_14] : memref<1x1xf32, #tpu.memory_space<smem>>
    %39 = vector.shape_cast %37 : vector<8x1xf32> to vector<1x8x1xf32>
    %cst_15 = arith.constant dense<0.000000e+00> : vector<1xf32>
    %40 = vector.multi_reduction <add>, %39, %cst_15 [1, 2] : vector<1x8x1xf32> to vector<1xf32>
    %41 = vector.shape_cast %40 : vector<1xf32> to vector<1x1x1xf32>
    %42 = vector.extract %41[0, 0, 0] : f32 from vector<1x1x1xf32>
    %43 = arith.addf %38, %42 : f32
    %c0_16 = arith.constant 0 : index
    %c0_17 = arith.constant 0 : index
    %44 = memref.load %arg4[%c0_16, %c0_17] : memref<1x1xf32, #tpu.memory_space<smem>>
    memref.store %43, %arg4[%c0_16, %c0_17] : memref<1x1xf32, #tpu.memory_space<smem>>
    %c0_i32_18 = arith.constant 0 : i32
    %45 = arith.cmpi eq, %arg0, %c0_i32_18 : i32
    %46 = arith.extui %45 : i1 to i32
    %c0_i32_19 = arith.constant 0 : i32
    %47 = arith.cmpi ne, %46, %c0_i32_19 : i32
    scf.if %47 {
      %c0_20 = arith.constant 0 : index
      %c0_21 = arith.constant 0 : index
      %48 = memref.load %arg4[%c0_20, %c0_21] : memref<1x1xf32, #tpu.memory_space<smem>>
      %cst_22 = arith.constant 0.178571433 : f32
      %49 = arith.mulf %48, %cst_22 : f32
      %c0_23 = arith.constant 0 : index
      %c0_24 = arith.constant 0 : index
      %50 = memref.load %arg3[%c0_23, %c0_24] : memref<1x1xf32, #tpu.memory_space<smem>>
      memref.store %49, %arg3[%c0_23, %c0_24] : memref<1x1xf32, #tpu.memory_space<smem>>
    } else {
    }
    return
  }
  func.func @transform_0(%arg0: i32) -> (i32, i32) {
    %c0_i32 = arith.constant 0 : i32
    %c0_i32_0 = arith.constant 0 : i32
    return %arg0, %c0_i32 : i32, i32
  }
  func.func @transform_1(%arg0: i32) -> (i32, i32) {
    %c0_i32 = arith.constant 0 : i32
    %c0_i32_0 = arith.constant 0 : i32
    return %arg0, %c0_i32 : i32, i32
  }
  func.func @transform_2(%arg0: i32) -> (i32, i32) {
    %c0_i32 = arith.constant 0 : i32
    %c0_i32_0 = arith.constant 0 : i32
    %c0_i32_1 = arith.constant 0 : i32
    return %c0_i32, %c0_i32_0 : i32, i32
  }
}

</mosaic_0001>

<bundles_post_ra>
// kernel: tpu_custom_call.1
= control target key start
LH: loop header
LB: loop body
LE: loop exit
PB: predicated region body
PF: predicated region fallthrough
CT: control target
= control target key end

     0   :  { %vm20_vm0 = vcmask 130048   ;;  %s155_s0 = inlined_call_operand.vmem [shape: f32[8,16], index: 0, kind: input, shape index: {}]   ;;  %s156_s1 = inlined_call_operand.vmem [shape: s32[8,1], index: 1, kind: input, shape index: {}]   ;;  %s157_s2 = inlined_call_operand.hbm [shape: f32[1,1], index: 2, kind: output, shape index: {}]  }
   0x1   :  { %v18_v0 = vld [vmem:[%s155_s0] sm:$0xff] }
   0x2   :  { %7 = vsyncpa [#allocation4], 0  ;;  %v21_v1 = vsel %vm20_vm0, %v18_v0, -inf  ;;  %v117_v2 = vmov 0   ;;  %v19_v3 = vld [vmem:[%s156_s1] sm:$0xff]  ;;  %v30_v7 = vlaneseq  ;;  %vm58_vm2 = vcmask 7168  }
   0x3   :  { %96 = vset.pattern.permute.xlu0 %v117_v2  ;;  %s105_s15 = scalar_lea.hbm %s157_s2, 16 }
   0x4   :  { %22 = vmax.xlane.f32.xlu0 %v21_v1  ;;  %v31_v8 = vand.u32 127, %v30_v7  ;;  %p106_p0 = scmp.ne.s32.totalorder %s157_s2, %s105_s15  ;;  %p109_p1 = scmp.lt.u32.totalorder %s105_s15, %s157_s2 }
   0x6   :  { %p111_p2 = pnand %p109_p1, %p106_p0 }
  0x1a   :  { %33 = vperm.xlu0 %96, %v19_v3  }
  0x91   :  { %v23_v4 = vpop.xlane.xlu0 %22 }
  0x92   :  { %v24_v5 = vsub.f32 %v18_v0, %v23_v4 }
  0x94   :  { %v25_v6 = vmul.f32 1.442695, %v24_v5 }
  0x96   :  { %97 = vpow2.f32 %v25_v6 }
  0x99   :  { %v34_v9 = vpop.permute.xlu0 %33 }
  0x9a   :  { %vm35_vm1 = vcmp.eq.s32.totalorder %v31_v8, %v34_v9 }
  0xa0   :  { %v98_v10 = vpop.eup %97 }
  0xa1   :  { %v27_v11 = vsel %vm20_vm0, %v98_v10, 0.0  ;;  %v36_v12 = vsel %vm35_vm1, %v98_v10, 0.0 }
  0xa2   :  { %28 = vadd.xlane.f32.xlu1 %v27_v11  ;;  %v37_v13 = vsel %vm20_vm0, %v36_v12, 0.0 }
  0xa6   :  { %38 = vadd.xlane.f32.xlu1 %v37_v13 }
 0x12f   :  { %v29_v14 = vpop.xlane.xlu1 %28 }
 0x130   :  { %99 = vrcp.f32 %v29_v14 }
 0x133   :  { %v39_v16 = vpop.xlane.xlu1 %38 }
 0x13a   :  { %v100_v15 = vpop.eup %99 }
 0x13b   :  { %v41_v17 = vmul.f32 %v100_v15, %v39_v16 }
 0x13d   :  { %v42_v18 = vmax.f32 %v41_v17, 1e-07 }
 0x13f   :  { %v43_v19 = vmin.f32 %v42_v18, 1.0 }
 0x141   :  { %101 = vlog2.f32 %v43_v19 }
 0x14b   :  { %v102_v20 = vpop.eup %101 }
 0x14c   :  { %v45_v21 = vmul.f32 0.6931472, %v102_v20 }
 0x14e   :  { %v46_v22 = vmul.f32 0.7, %v45_v21 }
 0x150   :  { %v47_v23 = vmul.f32 1.442695, %v46_v22 }
 0x152   :  { %103 = vpow2.f32 %v47_v23 }
 0x15c   :  { %v104_v24 = vpop.eup %103 }
 0x15d   :  { %v49_v25 = vsub.f32 1.0, %v104_v24 }
 0x15f   :  { %v59_v26 = vsel %vm58_vm2, %v49_v25, 0.0 }
 0x160   :  { %60 = vadd.xlane.f32.xlu1 %v59_v26 }
 0x1ed   :  { %v61_v27 = vpop.xlane.xlu1 %60 }
 0x1ee   :  { %v62_v28 = vrot.slane %v61_v27, 4 }
 0x1f0   :  { %v63_v29 = vadd.f32 %v62_v28, %v61_v27 }
 0x1f2   :  { %v64_v30 = vrot.slane %v63_v29, 2 }
 0x1f4   :  { %v65_v31 = vadd.f32 %v64_v30, %v63_v29 }
 0x1f6   :  { %v66_v32 = vrot.slane %v65_v31, 1 }
 0x1f8   :  { %v67_v33 = vadd.f32 %v66_v32, %v65_v31 }
 0x1fa   :  { %92 = vpush %v67_v33 }
 0x22b   :  { %s93_s0 = spop %92 }
 0x22c   :  { %s76_s1 = smul.f32 0.17857143, %s93_s0 }
 0x22e   :  { %78 = sst [smem:[#allocation3]] %s76_s1 }
 0x22f   :  { %114 = shalt.err (!%p111_p2)
}
 0x230   :  { %s118_s20 = smov [#allocation3]  }
 0x231   :  { %86 = dma.smem_to_hbm %s118_s20, 16, %s157_s2, [#allocation4]  }
 0x232   :  { %115 = dma.done.wait [#allocation4], 16  }
 0x233   :  { %116 = vsyncadd [#allocation4], 4294967280 }
 0x234   :  { %90 = sfence }
 0x235   :  { %91 = vsyncpa [#allocation4], 1 }

</bundles_post_ra>
